<compile_context>
chip_gen: v7x
topology: tpu7x:2x2x1
jax: 0.10.0
libtpu: 0.0.40
codegen_flags: <defaults>
</compile_context>

<pallas_src>
import functools

import jax
import jax.numpy as jnp
from jax import lax
from jax.experimental import pallas as pl
from jax.experimental.pallas import tpu as pltpu


def _round_up(x, m):
    return ((x + m - 1) // m) * m


def _cdiv(a, b):
    return (a + b - 1) // b


# Keep both tables on-chip only if they fit this budget: 20 MiB of tables plus
# ~1 MiB scratch + double-buffered (1, TB) outputs stays well inside the 32 MiB
# default scoped VMEM limit on every generation (v7x physical VMEM is 64 MiB).
_RESIDENT_TABLE_BUDGET_BYTES = 20 * 1024 * 1024


def _gmf_resident_kernel(TB,                      # static rows per grid step
                         u_idx_ref, i_idx_ref,    # scalar-prefetch (Bp,) i32 SMEM
                         u_tbl_ref, i_tbl_ref,    # (U,F)/(I,F) VMEM-resident tables
                         w_ref,                   # (1, F) predict weight, VMEM
                         b_ref,                   # (1,)   bias, SMEM
                         out_ref,                 # (1, TB) lane-dense output block
                         u_buf, i_buf):           # (TB, F) VMEM scratch
    """Fused gather (dynamic row reads from resident tables) + GMF compute."""
    base = pl.program_id(0) * TB

    def gather(r, carry):
        u_buf[pl.ds(r, 1), :] = u_tbl_ref[pl.ds(u_idx_ref[base + r], 1), :]
        i_buf[pl.ds(r, 1), :] = i_tbl_ref[pl.ds(i_idx_ref[base + r], 1), :]
        return carry

    lax.fori_loop(0, TB, gather, 0, unroll=8)

    # GMF interaction + predict layer on VPU (elementwise) + XLU (reduce).
    pred = jnp.sum(u_buf[...] * i_buf[...] * w_ref[...], axis=-1)        # (TB,)
    out_ref[...] = (pred + b_ref[0])[None, :].astype(out_ref.dtype)      # (1, TB)


def _gmf_hbm_kernel(TB,
                    u_idx_ref, i_idx_ref,     # scalar-prefetch (Bp,) i32 SMEM
                    u_tbl_ref, i_tbl_ref,     # embedding tables, raw HBM refs
                    w_ref, b_ref,
                    out_ref,                  # (1, TB) lane-dense output block
                    u_buf, i_buf, sem):       # (TB,F) scratch x2 + DMA sems (2,)
    """Fallback when tables exceed the on-chip budget: per-row DMA gather."""
    base = pl.program_id(0) * TB

    # Issue all 2*TB row copies first so they overlap inside the DMA engine.
    @pl.loop(0, TB)
    def _(r):
        pltpu.make_async_copy(
            u_tbl_ref.at[u_idx_ref[base + r]], u_buf.at[r], sem.at[0]).start()
        pltpu.make_async_copy(
            i_tbl_ref.at[i_idx_ref[base + r]], i_buf.at[r], sem.at[1]).start()

    # Wait on the exact descriptors that were issued (robust to any change in
    # row size / dtype, unlike the previous dummy-descriptor drain trick).
    @pl.loop(0, TB)
    def _(r):
        pltpu.make_async_copy(
            u_tbl_ref.at[u_idx_ref[base + r]], u_buf.at[r], sem.at[0]).wait()
        pltpu.make_async_copy(
            i_tbl_ref.at[i_idx_ref[base + r]], i_buf.at[r], sem.at[1]).wait()

    pred = jnp.sum(u_buf[...] * i_buf[...] * w_ref[...], axis=-1)
    out_ref[...] = (pred + b_ref[0])[None, :].astype(out_ref.dtype)


def _choose_tile(batch, tb_max):
    # Few large tiles; >= 2 tiles when the batch allows (v7x megacore split).
    tb = _round_up(max(_cdiv(batch, 2), 1), 8)
    tb = min(tb, _round_up(tb_max, 8), _round_up(batch, 8))
    return max(tb, 8)


def gmf_forward(user, item, params, *, tb_max=1024, force_hbm_tables=False):
    """Pallas GMF forward. user/item: int (B,). Returns f32 (B,)."""
    embed_user = params["embed_user"]          # (U, F) f32
    embed_item = params["embed_item"]          # (I, F) f32
    w = params["w"]                            # (1, F)
    b = params["b"]                            # (1,)

    B = user.shape[0]
    U, F = embed_user.shape
    I = embed_item.shape[0]

    TB = _choose_tile(B, tb_max)
    num_tiles = _cdiv(B, TB)
    Bp = num_tiles * TB

    # Pad ragged last tile with index 0 (a valid row); padded outputs dropped.
    user_p = jnp.pad(user.astype(jnp.int32), (0, Bp - B))
    item_p = jnp.pad(item.astype(jnp.int32), (0, Bp - B))

    table_bytes = (embed_user.size * embed_user.dtype.itemsize
                   + embed_item.size * embed_item.dtype.itemsize)
    resident = (not force_hbm_tables) and table_bytes <= _RESIDENT_TABLE_BUDGET_BYTES

    if resident:
        kernel = functools.partial(_gmf_resident_kernel, TB)
        table_specs = [
            pl.BlockSpec((U, F), lambda g, u_idx, i_idx: (0, 0)),   # resident
            pl.BlockSpec((I, F), lambda g, u_idx, i_idx: (0, 0)),   # resident
        ]
        scratch = [
            pltpu.VMEM((TB, F), jnp.float32),      # gathered user rows
            pltpu.VMEM((TB, F), jnp.float32),      # gathered item rows
        ]
    else:
        kernel = functools.partial(_gmf_hbm_kernel, TB)
        table_specs = [
            pl.BlockSpec(memory_space=pl.ANY),     # embed_user stays in HBM
            pl.BlockSpec(memory_space=pl.ANY),     # embed_item stays in HBM
        ]
        scratch = [
            pltpu.VMEM((TB, F), jnp.float32),
            pltpu.VMEM((TB, F), jnp.float32),
            pltpu.SemaphoreType.DMA((2,)),         # one counting sem per table
        ]

    grid_spec = pltpu.PrefetchScalarGridSpec(
        num_scalar_prefetch=2,                     # user_p, item_p -> SMEM
        grid=(num_tiles,),
        in_specs=table_specs + [
            pl.BlockSpec((1, F), lambda g, u_idx, i_idx: (0, 0)),   # w resident
            pl.BlockSpec(memory_space=pltpu.MemorySpace.SMEM),      # b scalar
        ],
        # Lane-dense output: one (1, TB) row per tile (unmasked stores).
        out_specs=pl.BlockSpec((1, TB), lambda g, u_idx, i_idx: (g, 0)),
        scratch_shapes=scratch,
    )

    out = pl.pallas_call(
        kernel,
        out_shape=jax.ShapeDtypeStruct((num_tiles, TB), jnp.float32),
        grid_spec=grid_spec,
        compiler_params=pltpu.CompilerParams(
            dimension_semantics=("parallel",),     # megacore split on v7x
            vmem_limit_bytes=32 * 1024 * 1024,     # covers budgeted residency
        ),
    )(user_p, item_p, embed_user, embed_item, w, b)

    return out.reshape(-1)[:B]                     # == prediction.view(-1)


def init_params(key, user_num, item_num, factor_num):
    """Deterministic synthetic parameters matching GMF.__init__ shapes/init."""
    k_u, k_i, k_w, k_b = jax.random.split(key, 4)
    # nn.init.normal_(std=0.01) on both embedding tables.
    embed_user = 0.01 * jax.random.normal(k_u, (user_num, factor_num), jnp.float32)
    embed_item = 0.01 * jax.random.normal(k_i, (item_num, factor_num), jnp.float32)
    # nn.Linear(factor_num, 1) default init: U(-1/sqrt(F), 1/sqrt(F)).
    bound = 1.0 / jnp.sqrt(float(factor_num))
    w = jax.random.uniform(k_w, (1, factor_num), jnp.float32, -bound, bound)
    b = jax.random.uniform(k_b, (1,), jnp.float32, -bound, bound)
    return {"embed_user": embed_user, "embed_item": embed_item, "w": w, "b": b}


def gmf_reference(user, item, params):
    u = jnp.take(params["embed_user"], user, axis=0)
    i = jnp.take(params["embed_item"], item, axis=0)
    return jnp.sum((u * i) * params["w"], axis=-1) + params["b"][0]


if __name__ == "__main__":
    user_num, item_num, factor_num = 10, 12, 32

    key = jax.random.PRNGKey(0)
    k_params, k_u1, k_i1, k_u2, k_i2 = jax.random.split(key, 5)
    params = init_params(k_params, user_num, item_num, factor_num)

    # Case 1: small batch, single tile, VMEM-resident tables.
    batch = 8
    user = jax.random.randint(k_u1, (batch,), 0, user_num, dtype=jnp.int32)
    item = jax.random.randint(k_i1, (batch,), 0, item_num, dtype=jnp.int32)
    pred = jax.block_until_ready(gmf_forward(user, item, params))
    ref = gmf_reference(user, item, params)
    assert pred.shape == (batch,)
    assert jnp.allclose(pred, ref, atol=1e-5, rtol=1e-5), (pred, ref)

    # Case 2: ragged batch -> 2 tiles (exercises padding + v7x megacore path).
    batch2 = 300
    user2 = jax.random.randint(k_u2, (batch2,), 0, user_num, dtype=jnp.int32)
    item2 = jax.random.randint(k_i2, (batch2,), 0, item_num, dtype=jnp.int32)
    pred2 = jax.block_until_ready(gmf_forward(user2, item2, params))
    ref2 = gmf_reference(user2, item2, params)
    assert pred2.shape == (batch2,)
    assert jnp.allclose(pred2, ref2, atol=1e-5, rtol=1e-5), (pred2, ref2)

    # Case 3: force the HBM-table fallback (used when tables exceed the VMEM
    # budget) so that path also compiles, runs and matches the reference.
    pred3 = jax.block_until_ready(
        gmf_forward(user2, item2, params, force_hbm_tables=True))
    assert jnp.allclose(pred3, ref2, atol=1e-5, rtol=1e-5), (pred3, ref2)

    print("KERNEL_OK")
</pallas_src>

<mosaic_0001>
module attributes {stable_mosaic.version = 11 : i64} {
  func.func @_gmf_resident_kernel(%arg0: i32, %arg1: memref<8xi32, #tpu.memory_space<smem>>, %arg2: memref<8xi32, #tpu.memory_space<smem>>, %arg3: memref<10x32xf32, #tpu.memory_space<vmem>>, %arg4: memref<12x32xf32, #tpu.memory_space<vmem>>, %arg5: memref<1x32xf32, #tpu.memory_space<vmem>>, %arg6: memref<1xf32, #tpu.memory_space<smem>>, %arg7: memref<1x8xf32, #tpu.memory_space<vmem>>, %arg8: memref<8x32xf32, #tpu.memory_space<vmem>>, %arg9: memref<8x32xf32, #tpu.memory_space<vmem>>) attributes {dimension_semantics = [#tpu.dimension_semantics<parallel>], iteration_bounds = array<i64: 1>, scalar_prefetch = 2 : i64, scratch_operands = 2 : i64, tpu.core_type = #tpu.core_type<tc>, window_params = [{pipeline_mode = #tpu.pipeline_mode<synchronous>, transform_indices = @transform_0, window_bounds = array<i64: 10, 32>}, {pipeline_mode = #tpu.pipeline_mode<synchronous>, transform_indices = @transform_1, window_bounds = array<i64: 12, 32>}, {pipeline_mode = #tpu.pipeline_mode<synchronous>, transform_indices = @transform_2, window_bounds = array<i64: 1, 32>}, {transform_indices = @transform_3, window_bounds = array<i64: 1>}, {transform_indices = @transform_4, window_bounds = array<i64: 1, 8>}]} {
    %c8_i32 = arith.constant 8 : i32
    %0 = arith.muli %arg0, %c8_i32 : i32
    %c0_i32 = arith.constant 0 : i32
    %1 = arith.addi %0, %c0_i32 : i32
    %2 = arith.index_cast %1 : i32 to index
    %3 = memref.load %arg1[%2] : memref<8xi32, #tpu.memory_space<smem>>
    %4 = arith.index_cast %3 : i32 to index
    %c0 = arith.constant 0 : index
    %5 = vector.load %arg3[%4, %c0] : memref<10x32xf32, #tpu.memory_space<vmem>>, vector<1x32xf32>
    %6 = arith.index_cast %c0_i32 : i32 to index
    %c0_0 = arith.constant 0 : index
    %7 = vector.load %arg8[%6, %c0_0] : memref<8x32xf32, #tpu.memory_space<vmem>>, vector<1x32xf32>
    tpu.vector_store %arg8[%6, %c0_0], %5 {strides = array<i32>} : memref<8x32xf32, #tpu.memory_space<vmem>>, vector<1x32xf32>,
    %8 = arith.addi %0, %c0_i32 : i32
    %9 = arith.index_cast %8 : i32 to index
    %10 = memref.load %arg2[%9] : memref<8xi32, #tpu.memory_space<smem>>
    %11 = arith.index_cast %10 : i32 to index
    %c0_1 = arith.constant 0 : index
    %12 = vector.load %arg4[%11, %c0_1] : memref<12x32xf32, #tpu.memory_space<vmem>>, vector<1x32xf32>
    %13 = arith.index_cast %c0_i32 : i32 to index
    %c0_2 = arith.constant 0 : index
    %14 = vector.load %arg9[%13, %c0_2] : memref<8x32xf32, #tpu.memory_space<vmem>>, vector<1x32xf32>
    tpu.vector_store %arg9[%13, %c0_2], %12 {strides = array<i32>} : memref<8x32xf32, #tpu.memory_space<vmem>>, vector<1x32xf32>,
    %c1_i32 = arith.constant 1 : i32
    %15 = arith.addi %0, %c1_i32 : i32
    %16 = arith.index_cast %15 : i32 to index
    %17 = memref.load %arg1[%16] : memref<8xi32, #tpu.memory_space<smem>>
    %18 = arith.index_cast %17 : i32 to index
    %c0_3 = arith.constant 0 : index
    %19 = vector.load %arg3[%18, %c0_3] : memref<10x32xf32, #tpu.memory_space<vmem>>, vector<1x32xf32>
    %20 = arith.index_cast %c1_i32 : i32 to index
    %c0_4 = arith.constant 0 : index
    %21 = vector.load %arg8[%20, %c0_4] : memref<8x32xf32, #tpu.memory_space<vmem>>, vector<1x32xf32>
    tpu.vector_store %arg8[%20, %c0_4], %19 {strides = array<i32>} : memref<8x32xf32, #tpu.memory_space<vmem>>, vector<1x32xf32>,
    %22 = arith.addi %0, %c1_i32 : i32
    %23 = arith.index_cast %22 : i32 to index
    %24 = memref.load %arg2[%23] : memref<8xi32, #tpu.memory_space<smem>>
    %25 = arith.index_cast %24 : i32 to index
    %c0_5 = arith.constant 0 : index
    %26 = vector.load %arg4[%25, %c0_5] : memref<12x32xf32, #tpu.memory_space<vmem>>, vector<1x32xf32>
    %27 = arith.index_cast %c1_i32 : i32 to index
    %c0_6 = arith.constant 0 : index
    %28 = vector.load %arg9[%27, %c0_6] : memref<8x32xf32, #tpu.memory_space<vmem>>, vector<1x32xf32>
    tpu.vector_store %arg9[%27, %c0_6], %26 {strides = array<i32>} : memref<8x32xf32, #tpu.memory_space<vmem>>, vector<1x32xf32>,
    %c2_i32 = arith.constant 2 : i32
    %29 = arith.addi %0, %c2_i32 : i32
    %30 = arith.index_cast %29 : i32 to index
    %31 = memref.load %arg1[%30] : memref<8xi32, #tpu.memory_space<smem>>
    %32 = arith.index_cast %31 : i32 to index
    %c0_7 = arith.constant 0 : index
    %33 = vector.load %arg3[%32, %c0_7] : memref<10x32xf32, #tpu.memory_space<vmem>>, vector<1x32xf32>
    %34 = arith.index_cast %c2_i32 : i32 to index
    %c0_8 = arith.constant 0 : index
    %35 = vector.load %arg8[%34, %c0_8] : memref<8x32xf32, #tpu.memory_space<vmem>>, vector<1x32xf32>
    tpu.vector_store %arg8[%34, %c0_8], %33 {strides = array<i32>} : memref<8x32xf32, #tpu.memory_space<vmem>>, vector<1x32xf32>,
    %36 = arith.addi %0, %c2_i32 : i32
    %37 = arith.index_cast %36 : i32 to index
    %38 = memref.load %arg2[%37] : memref<8xi32, #tpu.memory_space<smem>>
    %39 = arith.index_cast %38 : i32 to index
    %c0_9 = arith.constant 0 : index
    %40 = vector.load %arg4[%39, %c0_9] : memref<12x32xf32, #tpu.memory_space<vmem>>, vector<1x32xf32>
    %41 = arith.index_cast %c2_i32 : i32 to index
    %c0_10 = arith.constant 0 : index
    %42 = vector.load %arg9[%41, %c0_10] : memref<8x32xf32, #tpu.memory_space<vmem>>, vector<1x32xf32>
    tpu.vector_store %arg9[%41, %c0_10], %40 {strides = array<i32>} : memref<8x32xf32, #tpu.memory_space<vmem>>, vector<1x32xf32>,
    %c3_i32 = arith.constant 3 : i32
    %43 = arith.addi %0, %c3_i32 : i32
    %44 = arith.index_cast %43 : i32 to index
    %45 = memref.load %arg1[%44] : memref<8xi32, #tpu.memory_space<smem>>
    %46 = arith.index_cast %45 : i32 to index
    %c0_11 = arith.constant 0 : index
    %47 = vector.load %arg3[%46, %c0_11] : memref<10x32xf32, #tpu.memory_space<vmem>>, vector<1x32xf32>
    %48 = arith.index_cast %c3_i32 : i32 to index
    %c0_12 = arith.constant 0 : index
    %49 = vector.load %arg8[%48, %c0_12] : memref<8x32xf32, #tpu.memory_space<vmem>>, vector<1x32xf32>
    tpu.vector_store %arg8[%48, %c0_12], %47 {strides = array<i32>} : memref<8x32xf32, #tpu.memory_space<vmem>>, vector<1x32xf32>,
    %50 = arith.addi %0, %c3_i32 : i32
    %51 = arith.index_cast %50 : i32 to index
    %52 = memref.load %arg2[%51] : memref<8xi32, #tpu.memory_space<smem>>
    %53 = arith.index_cast %52 : i32 to index
    %c0_13 = arith.constant 0 : index
    %54 = vector.load %arg4[%53, %c0_13] : memref<12x32xf32, #tpu.memory_space<vmem>>, vector<1x32xf32>
    %55 = arith.index_cast %c3_i32 : i32 to index
    %c0_14 = arith.constant 0 : index
    %56 = vector.load %arg9[%55, %c0_14] : memref<8x32xf32, #tpu.memory_space<vmem>>, vector<1x32xf32>
    tpu.vector_store %arg9[%55, %c0_14], %54 {strides = array<i32>} : memref<8x32xf32, #tpu.memory_space<vmem>>, vector<1x32xf32>,
    %c4_i32 = arith.constant 4 : i32
    %57 = arith.addi %0, %c4_i32 : i32
    %58 = arith.index_cast %57 : i32 to index
    %59 = memref.load %arg1[%58] : memref<8xi32, #tpu.memory_space<smem>>
    %60 = arith.index_cast %59 : i32 to index
    %c0_15 = arith.constant 0 : index
    %61 = vector.load %arg3[%60, %c0_15] : memref<10x32xf32, #tpu.memory_space<vmem>>, vector<1x32xf32>
    %62 = arith.index_cast %c4_i32 : i32 to index
    %c0_16 = arith.constant 0 : index
    %63 = vector.load %arg8[%62, %c0_16] : memref<8x32xf32, #tpu.memory_space<vmem>>, vector<1x32xf32>
    tpu.vector_store %arg8[%62, %c0_16], %61 {strides = array<i32>} : memref<8x32xf32, #tpu.memory_space<vmem>>, vector<1x32xf32>,
    %64 = arith.addi %0, %c4_i32 : i32
    %65 = arith.index_cast %64 : i32 to index
    %66 = memref.load %arg2[%65] : memref<8xi32, #tpu.memory_space<smem>>
    %67 = arith.index_cast %66 : i32 to index
    %c0_17 = arith.constant 0 : index
    %68 = vector.load %arg4[%67, %c0_17] : memref<12x32xf32, #tpu.memory_space<vmem>>, vector<1x32xf32>
    %69 = arith.index_cast %c4_i32 : i32 to index
    %c0_18 = arith.constant 0 : index
    %70 = vector.load %arg9[%69, %c0_18] : memref<8x32xf32, #tpu.memory_space<vmem>>, vector<1x32xf32>
    tpu.vector_store %arg9[%69, %c0_18], %68 {strides = array<i32>} : memref<8x32xf32, #tpu.memory_space<vmem>>, vector<1x32xf32>,
    %c5_i32 = arith.constant 5 : i32
    %71 = arith.addi %0, %c5_i32 : i32
    %72 = arith.index_cast %71 : i32 to index
    %73 = memref.load %arg1[%72] : memref<8xi32, #tpu.memory_space<smem>>
    %74 = arith.index_cast %73 : i32 to index
    %c0_19 = arith.constant 0 : index
    %75 = vector.load %arg3[%74, %c0_19] : memref<10x32xf32, #tpu.memory_space<vmem>>, vector<1x32xf32>
    %76 = arith.index_cast %c5_i32 : i32 to index
    %c0_20 = arith.constant 0 : index
    %77 = vector.load %arg8[%76, %c0_20] : memref<8x32xf32, #tpu.memory_space<vmem>>, vector<1x32xf32>
    tpu.vector_store %arg8[%76, %c0_20], %75 {strides = array<i32>} : memref<8x32xf32, #tpu.memory_space<vmem>>, vector<1x32xf32>,
    %78 = arith.addi %0, %c5_i32 : i32
    %79 = arith.index_cast %78 : i32 to index
    %80 = memref.load %arg2[%79] : memref<8xi32, #tpu.memory_space<smem>>
    %81 = arith.index_cast %80 : i32 to index
    %c0_21 = arith.constant 0 : index
    %82 = vector.load %arg4[%81, %c0_21] : memref<12x32xf32, #tpu.memory_space<vmem>>, vector<1x32xf32>
    %83 = arith.index_cast %c5_i32 : i32 to index
    %c0_22 = arith.constant 0 : index
    %84 = vector.load %arg9[%83, %c0_22] : memref<8x32xf32, #tpu.memory_space<vmem>>, vector<1x32xf32>
    tpu.vector_store %arg9[%83, %c0_22], %82 {strides = array<i32>} : memref<8x32xf32, #tpu.memory_space<vmem>>, vector<1x32xf32>,
    %c6_i32 = arith.constant 6 : i32
    %85 = arith.addi %0, %c6_i32 : i32
    %86 = arith.index_cast %85 : i32 to index
    %87 = memref.load %arg1[%86] : memref<8xi32, #tpu.memory_space<smem>>
    %88 = arith.index_cast %87 : i32 to index
    %c0_23 = arith.constant 0 : index
    %89 = vector.load %arg3[%88, %c0_23] : memref<10x32xf32, #tpu.memory_space<vmem>>, vector<1x32xf32>
    %90 = arith.index_cast %c6_i32 : i32 to index
    %c0_24 = arith.constant 0 : index
    %91 = vector.load %arg8[%90, %c0_24] : memref<8x32xf32, #tpu.memory_space<vmem>>, vector<1x32xf32>
    tpu.vector_store %arg8[%90, %c0_24], %89 {strides = array<i32>} : memref<8x32xf32, #tpu.memory_space<vmem>>, vector<1x32xf32>,
    %92 = arith.addi %0, %c6_i32 : i32
    %93 = arith.index_cast %92 : i32 to index
    %94 = memref.load %arg2[%93] : memref<8xi32, #tpu.memory_space<smem>>
    %95 = arith.index_cast %94 : i32 to index
    %c0_25 = arith.constant 0 : index
    %96 = vector.load %arg4[%95, %c0_25] : memref<12x32xf32, #tpu.memory_space<vmem>>, vector<1x32xf32>
    %97 = arith.index_cast %c6_i32 : i32 to index
    %c0_26 = arith.constant 0 : index
    %98 = vector.load %arg9[%97, %c0_26] : memref<8x32xf32, #tpu.memory_space<vmem>>, vector<1x32xf32>
    tpu.vector_store %arg9[%97, %c0_26], %96 {strides = array<i32>} : memref<8x32xf32, #tpu.memory_space<vmem>>, vector<1x32xf32>,
    %c7_i32 = arith.constant 7 : i32
    %99 = arith.addi %0, %c7_i32 : i32
    %100 = arith.index_cast %99 : i32 to index
    %101 = memref.load %arg1[%100] : memref<8xi32, #tpu.memory_space<smem>>
    %102 = arith.index_cast %101 : i32 to index
    %c0_27 = arith.constant 0 : index
    %103 = vector.load %arg3[%102, %c0_27] : memref<10x32xf32, #tpu.memory_space<vmem>>, vector<1x32xf32>
    %104 = arith.index_cast %c7_i32 : i32 to index
    %c0_28 = arith.constant 0 : index
    %105 = vector.load %arg8[%104, %c0_28] : memref<8x32xf32, #tpu.memory_space<vmem>>, vector<1x32xf32>
    tpu.vector_store %arg8[%104, %c0_28], %103 {strides = array<i32>} : memref<8x32xf32, #tpu.memory_space<vmem>>, vector<1x32xf32>,
    %106 = arith.addi %0, %c7_i32 : i32
    %107 = arith.index_cast %106 : i32 to index
    %108 = memref.load %arg2[%107] : memref<8xi32, #tpu.memory_space<smem>>
    %109 = arith.index_cast %108 : i32 to index
    %c0_29 = arith.constant 0 : index
    %110 = vector.load %arg4[%109, %c0_29] : memref<12x32xf32, #tpu.memory_space<vmem>>, vector<1x32xf32>
    %111 = arith.index_cast %c7_i32 : i32 to index
    %c0_30 = arith.constant 0 : index
    %112 = vector.load %arg9[%111, %c0_30] : memref<8x32xf32, #tpu.memory_space<vmem>>, vector<1x32xf32>
    tpu.vector_store %arg9[%111, %c0_30], %110 {strides = array<i32>} : memref<8x32xf32, #tpu.memory_space<vmem>>, vector<1x32xf32>,
    %c8_i32_31 = arith.constant 8 : i32
    %c0_32 = arith.constant 0 : index
    %c0_33 = arith.constant 0 : index
    %113 = vector.load %arg8[%c0_32, %c0_33] : memref<8x32xf32, #tpu.memory_space<vmem>>, vector<8x32xf32>
    %c0_34 = arith.constant 0 : index
    %c0_35 = arith.constant 0 : index
    %114 = vector.load %arg9[%c0_34, %c0_35] : memref<8x32xf32, #tpu.memory_space<vmem>>, vector<8x32xf32>
    %115 = arith.mulf %113, %114 : vector<8x32xf32>
    %c0_36 = arith.constant 0 : index
    %c0_37 = arith.constant 0 : index
    %116 = vector.load %arg5[%c0_36, %c0_37] : memref<1x32xf32, #tpu.memory_space<vmem>>, vector<1x32xf32>
    %117 = vector.broadcast %116 : vector<1x32xf32> to vector<8x32xf32>
    %118 = arith.mulf %115, %117 : vector<8x32xf32>
    %cst = arith.constant dense<0.000000e+00> : vector<8xf32>
    %119 = vector.multi_reduction <add>, %118, %cst [1] : vector<8x32xf32> to vector<8xf32>
    %c0_38 = arith.constant 0 : index
    %120 = memref.load %arg6[%c0_38] : memref<1xf32, #tpu.memory_space<smem>>
    %121 = vector.broadcast %120 : f32 to vector<8xf32>
    %122 = arith.addf %119, %121 : vector<8xf32>
    %123 = vector.shape_cast %122 : vector<8xf32> to vector<1x8xf32>
    %c0_39 = arith.constant 0 : index
    %c0_40 = arith.constant 0 : index
    %124 = vector.load %arg7[%c0_39, %c0_40] : memref<1x8xf32, #tpu.memory_space<vmem>>, vector<1x8xf32>
    tpu.vector_store %arg7[%c0_39, %c0_40], %123 {strides = array<i32>} : memref<1x8xf32, #tpu.memory_space<vmem>>, vector<1x8xf32>,
    return
  }
  func.func @transform_0(%arg0: i32, %arg1: memref<8xi32, #tpu.memory_space<smem>>, %arg2: memref<8xi32, #tpu.memory_space<smem>>) -> (i32, i32) {
    %c0_i32 = arith.constant 0 : i32
    %c0_i32_0 = arith.constant 0 : i32
    %c0_i32_1 = arith.constant 0 : i32
    return %c0_i32, %c0_i32_0 : i32, i32
  }
  func.func @transform_1(%arg0: i32, %arg1: memref<8xi32, #tpu.memory_space<smem>>, %arg2: memref<8xi32, #tpu.memory_space<smem>>) -> (i32, i32) {
    %c0_i32 = arith.constant 0 : i32
    %c0_i32_0 = arith.constant 0 : i32
    %c0_i32_1 = arith.constant 0 : i32
    return %c0_i32, %c0_i32_0 : i32, i32
  }
  func.func @transform_2(%arg0: i32, %arg1: memref<8xi32, #tpu.memory_space<smem>>, %arg2: memref<8xi32, #tpu.memory_space<smem>>) -> (i32, i32) {
    %c0_i32 = arith.constant 0 : i32
    %c0_i32_0 = arith.constant 0 : i32
    %c0_i32_1 = arith.constant 0 : i32
    return %c0_i32, %c0_i32_0 : i32, i32
  }
  func.func @transform_3(%arg0: i32, %arg1: memref<8xi32, #tpu.memory_space<smem>>, %arg2: memref<8xi32, #tpu.memory_space<smem>>) -> i32 {
    %c0_i32 = arith.constant 0 : i32
    %c0_i32_0 = arith.constant 0 : i32
    return %c0_i32 : i32
  }
  func.func @transform_4(%arg0: i32, %arg1: memref<8xi32, #tpu.memory_space<smem>>, %arg2: memref<8xi32, #tpu.memory_space<smem>>) -> (i32, i32) {
    %c0_i32 = arith.constant 0 : i32
    %c0_i32_0 = arith.constant 0 : i32
    return %arg0, %c0_i32 : i32, i32
  }
}

</mosaic_0001>

<bundles_post_ra>
// kernel: tpu_custom_call.1
= control target key start
LH: loop header
LB: loop body
LE: loop exit
PB: predicated region body
PF: predicated region fallthrough
CT: control target
= control target key end

     0   :  { %s430_s0 = inlined_call_operand.vmem [shape: s32[8], index: 0, kind: input, shape index: {}]   ;;  %s431_s2 = inlined_call_operand.hbm [shape: f32[10,32], index: 2, kind: input, shape index: {}]   ;;  %s432_s3 = inlined_call_operand.hbm [shape: f32[12,32], index: 3, kind: input, shape index: {}]   ;;  %s433_s4 = inlined_call_operand.vmem [shape: f32[1,32], index: 4, kind: input, shape index: {}]   ;;  %s434_s5 = inlined_call_operand.<no memory space> [shape: f32[1], index: 5, kind: input, shape index: {}]   ;;  %s435_s6 = inlined_call_operand.hbm [shape: f32[1,8], index: 6, kind: output, shape index: {}]   ;;  %s436_s1 = inlined_call_operand.vmem [shape: s32[8], index: 1, kind: input, shape index: {}]  }
   0x1   :  { %s11_s23 = sshll.u32 %s430_s0, 4  ;;  %s15_s26 = sshll.u32 %s436_s1, 4  ;;  %s12_s23 = int_to_ptr.vmem [resolvable:$true] %s11_s23  ;;  %s16_s26 = int_to_ptr.vmem [resolvable:$true] %s15_s26 }
   0x2   :  { %s214_s27 = scalar_lea.vmem %s12_s23, 16  ;;  %p219_p1 = scmp.lt.s32.totalorder %s12_s23, %s12_s23 }
   0x3   :  { %p215_p0 = scmp.ne.s32.totalorder %s12_s23, %s214_s27  ;;  %p220_p2 = scmp.lt.s32.totalorder %s214_s27, %s214_s27 }
   0x5   :  { %p221_p3 = por %p220_p2, %p219_p1 }
   0x7   :  { %p222_p4 = pnand %p221_p3, %p215_p0 }
   0x9   :  { %225 = shalt.err (!%p222_p4)  }
   0xa   :  { %s312_s28 = smov [#allocation5]   ;;  %s226_s29 = scalar_lea.vmem %s16_s26, 16 }
   0xb   :  { %14 = dma.vmem_to_smem %s12_s23, 16, %s312_s28, [#allocation4] }
   0xc   :  { %p227_p5 = scmp.ne.s32.totalorder %s16_s26, %s226_s29  ;;  %p231_p6 = scmp.lt.s32.totalorder %s16_s26, %s16_s26 }
   0xd   :  { %p232_p7 = scmp.lt.s32.totalorder %s226_s29, %s226_s29 }
   0xf   :  { %p233_p8 = por %p232_p7, %p231_p6 }
  0x11   :  { %p234_p9 = pnand %p233_p8, %p227_p5 }
  0x13   :  { %237 = shalt.err (!%p234_p9)  }
  0x14   :  { %s313_s0 = smov [#allocation6]  }
  0x15   :  { %18 = dma.vmem_to_smem %s16_s26, 16, %s313_s0, [#allocation4] }
  0x16   :  { %304 = dma.done.wait [#allocation4], 32 }
  0x17   :  { %305 = vsyncadd [#allocation4], 4294967264 }
  0x18   :  { %21 = sfence }
  0x19   :  { %22 = vsyncpa [#allocation9], 0 }
  0x1a   :  { %23 = vsyncpa [#allocation12], 0 }
  0x1b   :  { %24 = vsyncpa [#allocation10], 0  ;;  %s314_s1 = smov [#allocation8]   ;;  %s238_s9 = scalar_lea.hbm %s431_s2, 256 }
  0x1c   :  { %s30_s30 = sshll.u32 %s314_s1, 4  ;;  %p239_p10 = scmp.ne.s32.totalorder %s431_s2, %s238_s9  ;;  %s31_s30 = int_to_ptr.vmem [resolvable:$true] %s30_s30 }
  0x1d   :  { %p242_p11 = scmp.lt.u32.totalorder %s238_s9, %s431_s2 }
  0x1f   :  { %p244_p12 = pnand %p242_p11, %p239_p10 }
  0x21   :  { %247 = shalt.err (!%p244_p12)
}
  0x22   :  { %s248_s14 = scalar_lea.vmem %s31_s30, 256  ;;  %p253_p0 = scmp.lt.s32.totalorder %s31_s30, %s31_s30 }
  0x23   :  { %p249_p13 = scmp.ne.s32.totalorder %s31_s30, %s248_s14  ;;  %p254_p1 = scmp.lt.s32.totalorder %s248_s14, %s248_s14 }
  0x25   :  { %p255_p2 = por %p254_p1, %p253_p0 }
  0x27   :  { %p256_p3 = pnand %p255_p2, %p249_p13 }
  0x29   :  { %259 = shalt.err (!%p256_p3)
}
  0x2a   :  { %s315_s15 = smov 128   ;;  %s316_s16 = smov 8  }
  0x2b   :  { %36 = dma.hbm_to_vmem [thread:$0]  %s431_s2, 256, %s31_s30, [#allocation9], %s315_s15, %s315_s15, %s316_s16  }
  0x2c   :  { %s317_s19 = smov [#allocation11]   ;;  %s260_s23 = scalar_lea.hbm %s432_s3, 256 }
  0x2d   :  { %s42_s20 = sshll.u32 %s317_s19, 4  ;;  %p261_p4 = scmp.ne.s32.totalorder %s432_s3, %s260_s23  ;;  %s43_s20 = int_to_ptr.vmem [resolvable:$true] %s42_s20 }
  0x2e   :  { %p264_p5 = scmp.lt.u32.totalorder %s260_s23, %s432_s3 }
  0x30   :  { %p266_p6 = pnand %p264_p5, %p261_p4 }
  0x32   :  { %269 = shalt.err (!%p266_p6)
}
  0x33   :  { %s270_s28 = scalar_lea.vmem %s43_s20, 256  ;;  %p275_p8 = scmp.lt.s32.totalorder %s43_s20, %s43_s20 }
  0x34   :  { %p271_p7 = scmp.ne.s32.totalorder %s43_s20, %s270_s28  ;;  %p276_p9 = scmp.lt.s32.totalorder %s270_s28, %s270_s28 }
  0x36   :  { %p277_p10 = por %p276_p9, %p275_p8 }
  0x38   :  { %p278_p11 = pnand %p277_p10, %p271_p7 }
  0x3a   :  { %281 = shalt.err (!%p278_p11)
}
  0x3b   :  { %48 = dma.hbm_to_vmem [thread:$0]  %s432_s3, 256, %s43_s20, [#allocation12], %s315_s15, %s315_s15, %s316_s16  }
  0x3c   :  { %306 = dma.done.wait [#allocation9], 256  }
  0x3d   :  { %307 = vsyncadd [#allocation9], 4294967040 }
  0x3e   :  { %308 = dma.done.wait [#allocation12], 256  }
  0x3f   :  { %309 = vsyncadd [#allocation12], 4294967040  ;;  %s60_s0 = sld [smem:[#allocation5]]  ;;  %s192_s30 = sld [smem:[#allocation5 + $0x1]]  ;;  %vm63_vm0 = vcmask 253952   ;;  %vm143_vm1 = vcmask 261120   ;;  %v151_v22 = vlaneseq  ;;  %v148_v25 = vstv %s434_s5 }
  0x40   :  { %s65_s1 = sld [smem:[#allocation6]]  ;;  %s193_s7 = sld [smem:[#allocation6 + $0x1]]  ;;  %v206_v18 = vld [vmem:[%s433_s4] ss:$0 sm:$0xff]  ;;  %vm158_vm2 = vcmask 57344  }
  0x41   :  { %s194_s8 = sld [smem:[#allocation5 + $0x2]]  ;;  %s196_s10 = sld [smem:[#allocation5 + $0x3]]  ;;  %v152_v23 = vand.u32 127, %v151_v22  ;;  %v154_v24 = vshrl.u32 %v151_v22, 7 }
  0x42   :  { %s195_s9 = sld [smem:[#allocation6 + $0x2]]  ;;  %s197_s11 = sld [smem:[#allocation6 + $0x3]] }
  0x43   :  { %s384_s12 = sld [smem:[#allocation5 + $0x4]]  ;;  %s388_s14 = sld [smem:[#allocation5 + $0x5]]  ;;  %v155_v26 = vsub.s32 %v152_v23, %v154_v24 }
  0x44   :  { %s386_s13 = sld [smem:[#allocation6 + $0x4]]  ;;  %s390_s3 = sld [smem:[#allocation6 + $0x5]] }
  0x45   :  { %s61_s15 = scalar_lea.vmem [#allocation8], %s60_s0  ;;  %s71_s17 = scalar_lea.vmem [#allocation8], %s192_s30 }
  0x46   :  { %v62_v0 = vld [vmem:[%s61_s15] sm:$0x1]  ;;  %s66_s16 = scalar_lea.vmem [#allocation11], %s65_s1  ;;  %s75_s18 = scalar_lea.vmem [#allocation11], %s193_s7 }
  0x47   :  { %v67_v1 = vld [vmem:[%s66_s16] sm:$0x1]  ;;  %64 = vst.msk [vmem:[#allocation2] sm:$0x1] %vm63_vm0, %v62_v0  ;;  %s80_s19 = scalar_lea.vmem [#allocation8], %s194_s8  ;;  %s89_s21 = scalar_lea.vmem [#allocation8], %s196_s10 }
  0x48   :  { %68 = vst.msk [vmem:[#allocation3] sm:$0x1] %vm63_vm0, %v67_v1  ;;  %v72_v2 = vld [vmem:[%s71_s17] sm:$0x1]  ;;  %s84_s20 = scalar_lea.vmem [#allocation11], %s195_s9  ;;  %s93_s22 = scalar_lea.vmem [#allocation11], %s197_s11 }
  0x49   :  { %v76_v3 = vld [vmem:[%s75_s18] sm:$0x1]  ;;  %73 = vst.msk [vmem:[#allocation2 + $0x1] sm:$0x1] %vm63_vm0, %v72_v2  ;;  %s98_s23 = scalar_lea.vmem [#allocation8], %s384_s12  ;;  %s107_s25 = scalar_lea.vmem [#allocation8], %s388_s14 }
  0x4a   :  { %77 = vst.msk [vmem:[#allocation3 + $0x1] sm:$0x1] %vm63_vm0, %v76_v3  ;;  %v81_v4 = vld [vmem:[%s80_s19] sm:$0x1]  ;;  %s102_s24 = scalar_lea.vmem [#allocation11], %s386_s13  ;;  %s111_s26 = scalar_lea.vmem [#allocation11], %s390_s3 }
  0x4b   :  { %v85_v5 = vld [vmem:[%s84_s20] sm:$0x1]  ;;  %82 = vst.msk [vmem:[#allocation2 + $0x2] sm:$0x1] %vm63_vm0, %v81_v4  ;;  %s202_s27 = sld [smem:[#allocation5 + $0x6]]  ;;  %s204_s2 = sld [smem:[#allocation5 + $0x7]] }
  0x4c   :  { %86 = vst.msk [vmem:[#allocation3 + $0x2] sm:$0x1] %vm63_vm0, %v85_v5  ;;  %v90_v6 = vld [vmem:[%s89_s21] sm:$0x1]  ;;  %s203_s28 = sld [smem:[#allocation6 + $0x6]]  ;;  %s205_s29 = sld [smem:[#allocation6 + $0x7]] }
  0x4d   :  { %v94_v7 = vld [vmem:[%s93_s22] sm:$0x1]  ;;  %91 = vst.msk [vmem:[#allocation2 + $0x3] sm:$0x1] %vm63_vm0, %v90_v6  ;;  %s318_s12 = smov [#allocation13]  }
  0x4e   :  { %95 = vst.msk [vmem:[#allocation3 + $0x3] sm:$0x1] %vm63_vm0, %v94_v7  ;;  %v99_v8 = vld [vmem:[%s98_s23] sm:$0x1]  ;;  %s166_s13 = sshll.u32 %s318_s12, 4  ;;  %s167_s13 = int_to_ptr.vmem [resolvable:$true] %s166_s13 }
  0x4f   :  { %v103_v9 = vld [vmem:[%s102_s24] sm:$0x1]  ;;  %100 = vst.msk [vmem:[#allocation2 + $0x4] sm:$0x1] %vm63_vm0, %v99_v8  ;;  %s282_s4 = scalar_lea.vmem %s167_s13, 16  ;;  %s286_s14 = scalar_lea.vmem %s167_s13, 32 }
  0x50   :  { %104 = vst.msk [vmem:[#allocation3 + $0x4] sm:$0x1] %vm63_vm0, %v103_v9  ;;  %v108_v10 = vld [vmem:[%s107_s25] sm:$0x1]  ;;  %p283_p12 = scmp.ne.s32.totalorder %s167_s13, %s282_s4  ;;  %p287_p13 = scmp.lt.s32.totalorder %s167_s13, %s167_s13 }
  0x51   :  { %v112_v11 = vld [vmem:[%s111_s26] sm:$0x1]  ;;  %109 = vst.msk [vmem:[#allocation2 + $0x5] sm:$0x1] %vm63_vm0, %v108_v10  ;;  %s116_s0 = scalar_lea.vmem [#allocation8], %s202_s27  ;;  %s125_s30 = scalar_lea.vmem [#allocation8], %s204_s2 }
  0x52   :  { %113 = vst.msk [vmem:[#allocation3 + $0x5] sm:$0x1] %vm63_vm0, %v112_v11  ;;  %v117_v12 = vld [vmem:[%s116_s0] sm:$0x1]  ;;  %s120_s1 = scalar_lea.vmem [#allocation11], %s203_s28  ;;  %s129_s7 = scalar_lea.vmem [#allocation11], %s205_s29 }
  0x53   :  { %118 = vst.msk [vmem:[#allocation2 + $0x6] sm:$0x1] %vm63_vm0, %v117_v12  ;;  %v121_v13 = vld [vmem:[%s120_s1] sm:$0x1]  ;;  %p288_p0 = scmp.lt.s32.totalorder %s286_s14, %s282_s4 }
  0x54   :  { %v126_v14 = vld [vmem:[%s125_s30] sm:$0x1]  ;;  %122 = vst.msk [vmem:[#allocation3 + $0x6] sm:$0x1] %vm63_vm0, %v121_v13 }
  0x55   :  { %127 = vst.msk [vmem:[#allocation2 + $0x7] sm:$0x1] %vm63_vm0, %v126_v14  ;;  %v130_v15 = vld [vmem:[%s129_s7] sm:$0x1]  ;;  %p289_p1 = por %p288_p0, %p287_p13 }
  0x56   :  { %131 = vst.msk [vmem:[#allocation3 + $0x7] sm:$0x1] %vm63_vm0, %v130_v15 }
  0x57   :  { %p290_p2 = pnand %p289_p1, %p283_p12 }
  0x5c   :  { %v132_v16 = vld [vmem:[#allocation2] sm:$0xff] }
  0x5d   :  { %v133_v17 = vld [vmem:[#allocation3] sm:$0xff] }
  0x5e   :  { %v134_v19 = vmul.f32 %v133_v17, %v132_v16 }
  0x60   :  { %v142_v20 = vmul.f32 %v206_v18, %v134_v19 }
  0x62   :  { %v144_v21 = vsel %vm143_vm1, %v142_v20, 0.0 }
  0x63   :  { %145 = vadd.xlane.f32.xlu0 %v144_v21 }
  0xf0   :  { %v146_v27 = vpop.xlane.xlu0 %145 }
  0xf1   :  { %v149_v28 = vadd.f32 %v148_v25, %v146_v27 }
  0xf3   :  { %v156_v29 = vrot.slane %v149_v28, %v155_v26 }
  0xf5   :  { %159 = vst.msk [vmem:[#allocation13] sm:$0x1] %vm158_vm2, %v156_v29 }
  0xf6   :  { %293 = shalt.err (!%p290_p2)
}
  0xf7   :  { %s294_s5 = scalar_lea.hbm %s435_s6, 16 }
  0xf8   :  { %p295_p3 = scmp.ne.s32.totalorder %s435_s6, %s294_s5  ;;  %p298_p4 = scmp.lt.u32.totalorder %s294_s5, %s435_s6 }
  0xfa   :  { %p300_p5 = pnand %p298_p4, %p295_p3 }
  0xfc   :  { %303 = shalt.err (!%p300_p5)
}
  0xfd   :  { %169 = dma.vmem_to_hbm [thread:$0]  %s167_s13, 16, %s435_s6, [#allocation10]  }
  0xfe   :  { %310 = dma.done.wait [#allocation10], 16  }
  0xff   :  { %311 = vsyncadd [#allocation10], 4294967280 }
 0x100   :  { %173 = vsyncpa [#allocation9], 1 }
 0x101   :  { %174 = vsyncpa [#allocation12], 1 }
 0x102   :  { %175 = vsyncpa [#allocation10], 1 }

</bundles_post_ra>
